<compile_context>
chip_gen: v5e
topology: v5e:2x2
jax: 0.10.0
libtpu: 0.0.40
codegen_flags: <defaults>
</compile_context>

<pallas_src>
import functools

import jax
import jax.numpy as jnp
import numpy as np
from jax.experimental import pallas as pl
from jax.experimental.pallas import tpu as pltpu


def _round_up(x, m):
    return ((x + m - 1) // m) * m


def _vmem_budget_bytes():
    """Per-generation scoped-VMEM budget (bytes)."""
    kind = ""
    try:
        kind = jax.devices()[0].device_kind.lower()
    except Exception:  # pragma: no cover - defensive
        pass
    if "v5" in kind or "v6" in kind:
        # Physical VMEM is 128 MiB on v5e / v6e; these chips are HBM-BW bound
        # here, so raise the scoped limit and use big batch tiles.
        return 96 * 1024 * 1024
    # v7x has only 64 MiB physical VMEM per TensorCore; also the safe default
    # for unknown generations.
    return 32 * 1024 * 1024


def _per_row_vmem_bytes(dp, cp, emb_itemsize):
    """Approximate VMEM bytes needed per batch row of a tile.

    Double-buffered e0/e1 input tiles (2 arrays x 2 pipeline buffers) plus the
    in-kernel temporaries (f32 upcasts, normalized copies, bf16 matmul
    operand, per-half logits/selects).
    """
    return dp * (4 * emb_itemsize + 20) + cp * 12 + 64


def _multitask_loss_kernel(e0_ref, e1_ref, lab_ref, w_ref, b_ref, part_ref,
                           *, true_b, num_classes):
    i = pl.program_id(0)
    tile_b = e0_ref.shape[0]
    cp = w_ref.shape[1]

    e0 = e0_ref[...].astype(jnp.float32)              # [tb, Dp]
    e1 = e1_ref[...].astype(jnp.float32)              # [tb, Dp]
    lab = lab_ref[...].astype(jnp.float32)            # [tb, 3]
    sim = lab[:, 0:1]                                 # distill target
    y0 = lab[:, 1:2]                                  # domain label for e0 rows
    y1 = lab[:, 2:3]                                  # domain label for e1 rows

    # valid-row mask: global batch may be padded up to a multiple of tile_b.
    row = i * tile_b + jax.lax.broadcasted_iota(jnp.int32, (tile_b, 1), 0)
    valid = row < true_b                               # [tb, 1]

    # ---- shared squared-norm row sums (computed once, reused twice) --------
    s0 = jnp.sum(e0 * e0, axis=1, keepdims=True)       # [tb, 1]
    s1 = jnp.sum(e1 * e1, axis=1, keepdims=True)       # [tb, 1]
    d01 = jnp.sum(e0 * e1, axis=1, keepdims=True)      # [tb, 1]

    # ---- distill loss: MSE(cosine_sim, labels[:, 0]) ------------------------
    #   cos = dot / max(|e0||e1|, 1e-8) == dot * rsqrt(max(s0*s1, 1e-16))
    cos = d01 * jax.lax.rsqrt(jnp.maximum(s0 * s1, 1e-16))
    dd = cos - sim
    distill_part = jnp.sum(jnp.where(valid, dd * dd, 0.0))

    # ---- L2 normalize (torch F.normalize, eps=1e-12) ------------------------
    e0n = e0 * jax.lax.rsqrt(jnp.maximum(s0, 1e-24))
    e1n = e1 * jax.lax.rsqrt(jnp.maximum(s1, 1e-24))

    # ---- fused head matmul, once per embedding half (no [2*tb, D] concat) ---
    w = w_ref[...]                                     # [Dp, CP] bf16, resident
    bias = b_ref[...]                                  # [1, CP] f32 (pad=-1e30)
    col = jax.lax.broadcasted_iota(jnp.int32, (1, cp), 1)
    is_reg = col == num_classes                        # single regression column

    def head_losses(e_n, y_f):
        logits = jnp.dot(e_n.astype(jnp.bfloat16), w,
                         preferred_element_type=jnp.float32) + bias  # [tb, CP]
        y_i = y_f.astype(jnp.int32)
        # Pad columns already carry a -1e30 bias; only mask the reg column.
        logits_cls = jnp.where(is_reg, -1e30, logits)
        m = jnp.max(logits_cls, axis=1, keepdims=True)
        lse = m + jnp.log(jnp.sum(jnp.exp(logits_cls - m), axis=1,
                                  keepdims=True))
        picked = jnp.sum(jnp.where(col == y_i, logits, 0.0), axis=1,
                         keepdims=True)
        ce = jnp.sum(jnp.where(valid, lse - picked, 0.0))
        pred = jnp.sum(jnp.where(is_reg, logits, 0.0), axis=1, keepdims=True)
        r = pred - y_f
        reg = jnp.sum(jnp.where(valid, r * r, 0.0))
        return ce, reg

    ce0, reg0 = head_losses(e0n, y0)
    ce1, reg1 = head_losses(e1n, y1)
    ce_part = ce0 + ce1
    reg_part = reg0 + reg1

    # ---- per-tile partial sums: write this tile's own output block ----------
    # (race-free under a "parallel" batch axis / v7x megacore split)
    lane = jax.lax.broadcasted_iota(jnp.int32, (1, 8, 128), 2)
    sub = jax.lax.broadcasted_iota(jnp.int32, (1, 8, 128), 1)
    zero_sub = sub == 0
    out = jnp.where(zero_sub & (lane == 0), distill_part,
          jnp.where(zero_sub & (lane == 1), ce_part,
          jnp.where(zero_sub & (lane == 2), reg_part,
                    jnp.zeros((1, 8, 128), jnp.float32))))
    part_ref[...] = out


def multitask_distill_loss(e0, e1, labels, wc, bc, wr, br, *, block_b=None):
    """Returns (distill_loss, cls_domain_loss, reg_domain_loss) f32 scalars.

    e0, e1 : [B, D] embeddings (f32 or bf16; bf16 halves HBM traffic)
    labels : [B, 3]  (col 0: similarity target, cols 1/2: domain class ids)
    wc     : [D, C] classification weight (pre-transposed), bc: [1, C] / [C]
    wr     : [D, 1] regression weight,                      br: [1, 1] / [1]
    """
    b, d = e0.shape
    if b == 0:
        raise ValueError("multitask_distill_loss: empty batch")
    c = wc.shape[1]

    cp = _round_up(c + 1, 128)          # fused head lane width
    dp = _round_up(d, 128)              # lane-padded embedding dim

    # Fuse the two heads into one lane-padded bf16 weight [Dp, CP]:
    # columns [0, C) = classification, column C = regression, rest zero pad.
    # Pad columns get a -1e30 BIAS so the kernel need not mask them.
    w_fused = jnp.zeros((dp, cp), jnp.float32)
    w_fused = w_fused.at[:d, :c].set(wc.astype(jnp.float32))
    w_fused = w_fused.at[:d, c:c + 1].set(wr.astype(jnp.float32))
    w_fused = w_fused.astype(jnp.bfloat16)
    b_fused = jnp.full((1, cp), -1e30, jnp.float32)
    b_fused = b_fused.at[:, :c].set(bc.reshape(1, c).astype(jnp.float32))
    b_fused = b_fused.at[:, c:c + 1].set(br.reshape(1, 1).astype(jnp.float32))

    # Single [B, 3] label stream (one DMA per tile instead of three).
    labels_f = labels.astype(jnp.float32)

    # Zero-pad the lane axis to a multiple of 128 (norms/dots/logits unchanged).
    if dp != d:
        e0 = jnp.pad(e0, ((0, 0), (0, dp - d)))
        e1 = jnp.pad(e1, ((0, 0), (0, dp - d)))

    # ---- generation-aware tile sizing ---------------------------------------
    emb_itemsize = jnp.dtype(e0.dtype).itemsize
    per_row = _per_row_vmem_bytes(dp, cp, emb_itemsize)
    vmem_budget = _vmem_budget_bytes()
    if block_b is None:
        cap = int((vmem_budget // 2) // per_row)
        tile_b = min(1024, max(8, (cap // 8) * 8), _round_up(b, 8))
    else:
        tile_b = min(_round_up(block_b, 8), _round_up(b, 8))
    tile_b = max(8, (tile_b // 8) * 8)

    est_vmem = (tile_b * per_row
                + 2 * (dp * cp * 2 + cp * 4)   # resident fused weight + bias
                + 2 * 8 * 128 * 4)             # per-tile partial-sum block
    assert est_vmem <= vmem_budget, (
        f"tile_b={tile_b} needs ~{est_vmem} B of VMEM but the budget is "
        f"{vmem_budget} B; pass a smaller block_b or reduce D / C.")

    bp = _round_up(b, tile_b)
    if bp != b:
        e0 = jnp.pad(e0, ((0, bp - b), (0, 0)))
        e1 = jnp.pad(e1, ((0, bp - b), (0, 0)))
        labels_f = jnp.pad(labels_f, ((0, bp - b), (0, 0)))
    num_tiles = bp // tile_b

    emb_spec = pl.BlockSpec((tile_b, dp), lambda i: (i, 0))
    lab_spec = pl.BlockSpec((tile_b, 3), lambda i: (i, 0))
    w_spec = pl.BlockSpec((dp, cp), lambda i: (0, 0))     # resident across grid
    b_spec = pl.BlockSpec((1, cp), lambda i: (0, 0))
    out_spec = pl.BlockSpec((1, 8, 128), lambda i: (i, 0, 0))

    kernel = functools.partial(_multitask_loss_kernel, true_b=b, num_classes=c)
    parts = pl.pallas_call(
        kernel,
        out_shape=jax.ShapeDtypeStruct((num_tiles, 8, 128), jnp.float32),
        grid_spec=pltpu.PrefetchScalarGridSpec(
            num_scalar_prefetch=0,
            grid=(num_tiles,),
            in_specs=[emb_spec, emb_spec, lab_spec, w_spec, b_spec],
            out_specs=out_spec),
        compiler_params=pltpu.CompilerParams(
            dimension_semantics=("parallel",),   # tiles independent -> megacore
            vmem_limit_bytes=vmem_budget),
    )(e0, e1, labels_f, w_fused, b_fused)

    # Tiny cross-tile reduction + mean normalization in the wrapper.
    sums = jnp.sum(parts, axis=0)                 # [8, 128]
    distill = sums[0, 0] / b
    cls = sums[0, 1] / (2.0 * b)
    reg = sums[0, 2] / (2.0 * b)
    return distill, cls, reg


def _reference(e0, e1, labels, wc, bc, wr, br):
    cos = jnp.sum(e0 * e1, 1) / jnp.maximum(
        jnp.linalg.norm(e0, axis=1) * jnp.linalg.norm(e1, axis=1), 1e-8)
    distill = jnp.mean((cos - labels[:, 0]) ** 2)
    e0n = e0 / jnp.maximum(jnp.linalg.norm(e0, axis=1, keepdims=True), 1e-12)
    e1n = e1 / jnp.maximum(jnp.linalg.norm(e1, axis=1, keepdims=True), 1e-12)
    X = jnp.concatenate([e0n, e1n], axis=0)
    y = jnp.concatenate([labels[:, 1], labels[:, 2]], axis=0)
    logits = X @ wc + bc
    logp = jax.nn.log_softmax(logits, axis=1)
    yi = y.astype(jnp.int32)
    ce = -jnp.mean(jnp.take_along_axis(logp, yi[:, None], axis=1)[:, 0])
    pred = (X @ wr + br)[:, 0]
    reg = jnp.mean((pred - y) ** 2)
    return distill, ce, reg


if __name__ == "__main__":
    B, D, C = 8, 32, 4   # batch pairs, sentence_embedding_dim, domain_label_count

    key = jax.random.PRNGKey(0)
    k = jax.random.split(key, 8)
    e0 = jax.random.normal(k[0], (B, D), jnp.float32)
    e1 = jax.random.normal(k[1], (B, D), jnp.float32)
    sim = jax.random.uniform(k[2], (B,), jnp.float32, minval=-1.0, maxval=1.0)
    dom0 = jax.random.randint(k[3], (B,), 0, C).astype(jnp.float32)
    dom1 = jax.random.randint(k[4], (B,), 0, C).astype(jnp.float32)
    labels = jnp.stack([sim, dom0, dom1], axis=1)                 # [B, 3]

    # Deterministic Linear params (PyTorch-style scale 1/sqrt(D)), pre-transposed.
    bound = 1.0 / jnp.sqrt(float(D))
    wc = jax.random.uniform(k[5], (D, C), jnp.float32, -bound, bound)
    bc = jax.random.uniform(k[6], (1, C), jnp.float32, -bound, bound)
    wr = jax.random.uniform(k[7], (D, 1), jnp.float32, -bound, bound)
    br = jnp.zeros((1, 1), jnp.float32)

    out = multitask_distill_loss(e0, e1, labels, wc, bc, wr, br)
    out = jax.block_until_ready(out)

    ref = _reference(e0, e1, labels, wc, bc, wr, br)
    tols = [dict(rtol=1e-4, atol=1e-5),   # distill: pure f32 VPU math
            dict(rtol=2e-2, atol=2e-2),   # cls: bf16 MXU operands
            dict(rtol=2e-2, atol=2e-2)]   # reg: bf16 MXU operands
    for got, want, tol in zip(out, ref, tols):
        np.testing.assert_allclose(np.asarray(got), np.asarray(want), **tol)
    print("KERNEL_OK")
</pallas_src>

<mosaic_0001>
module attributes {stable_mosaic.version = 11 : i64} {
  func.func @_multitask_loss_kernel(%arg0: i32, %arg1: memref<8x128xf32, #tpu.memory_space<vmem>>, %arg2: memref<8x128xf32, #tpu.memory_space<vmem>>, %arg3: memref<8x3xf32, #tpu.memory_space<vmem>>, %arg4: memref<128x128xbf16, #tpu.memory_space<vmem>>, %arg5: memref<1x128xf32, #tpu.memory_space<vmem>>, %arg6: memref<1x8x128xf32, #tpu.memory_space<vmem>>) attributes {dimension_semantics = [#tpu.dimension_semantics<parallel>], iteration_bounds = array<i64: 1>, scalar_prefetch = 0 : i64, scratch_operands = 0 : i64, tpu.core_type = #tpu.core_type<tc>, window_params = [{transform_indices = @transform_0, window_bounds = array<i64: 8, 128>}, {transform_indices = @transform_1, window_bounds = array<i64: 8, 128>}, {transform_indices = @transform_2, window_bounds = array<i64: 8, 3>}, {pipeline_mode = #tpu.pipeline_mode<synchronous>, transform_indices = @transform_3, window_bounds = array<i64: 128, 128>}, {pipeline_mode = #tpu.pipeline_mode<synchronous>, transform_indices = @transform_4, window_bounds = array<i64: 1, 128>}, {transform_indices = @transform_5, window_bounds = array<i64: 1, 8, 128>}]} {
    %c0 = arith.constant 0 : index
    %c0_0 = arith.constant 0 : index
    %0 = vector.load %arg1[%c0, %c0_0] : memref<8x128xf32, #tpu.memory_space<vmem>>, vector<8x128xf32>
    %c0_1 = arith.constant 0 : index
    %c0_2 = arith.constant 0 : index
    %1 = vector.load %arg2[%c0_1, %c0_2] : memref<8x128xf32, #tpu.memory_space<vmem>>, vector<8x128xf32>
    %c0_3 = arith.constant 0 : index
    %c0_4 = arith.constant 0 : index
    %2 = vector.load %arg3[%c0_3, %c0_4] : memref<8x3xf32, #tpu.memory_space<vmem>>, vector<8x3xf32>
    %3 = vector.extract_strided_slice %2 {offsets = [0, 0], sizes = [8, 1], strides = [1, 1]} : vector<8x3xf32> to vector<8x1xf32>
    %4 = vector.extract_strided_slice %2 {offsets = [0, 1], sizes = [8, 1], strides = [1, 1]} : vector<8x3xf32> to vector<8x1xf32>
    %5 = vector.extract_strided_slice %2 {offsets = [0, 2], sizes = [8, 1], strides = [1, 1]} : vector<8x3xf32> to vector<8x1xf32>
    %c8_i32 = arith.constant 8 : i32
    %6 = arith.muli %arg0, %c8_i32 : i32
    %7 = tpu.iota {dimensions = array<i32: 0>} : vector<8x1xi32>
    %8 = vector.broadcast %6 : i32 to vector<8x1xi32>
    %9 = arith.addi %8, %7 : vector<8x1xi32>
    %c8_i32_5 = arith.constant 8 : i32
    %10 = vector.broadcast %c8_i32_5 : i32 to vector<8x1xi32>
    %11 = arith.cmpi slt, %9, %10 : vector<8x1xi32>
    %12 = arith.mulf %0, %0 : vector<8x128xf32>
    %cst = arith.constant dense<0.000000e+00> : vector<8xf32>
    %13 = vector.multi_reduction <add>, %12, %cst [1] : vector<8x128xf32> to vector<8xf32>
    %14 = vector.shape_cast %13 : vector<8xf32> to vector<8x1xf32>
    %15 = arith.mulf %1, %1 : vector<8x128xf32>
    %cst_6 = arith.constant dense<0.000000e+00> : vector<8xf32>
    %16 = vector.multi_reduction <add>, %15, %cst_6 [1] : vector<8x128xf32> to vector<8xf32>
    %17 = vector.shape_cast %16 : vector<8xf32> to vector<8x1xf32>
    %18 = arith.mulf %0, %1 : vector<8x128xf32>
    %cst_7 = arith.constant dense<0.000000e+00> : vector<8xf32>
    %19 = vector.multi_reduction <add>, %18, %cst_7 [1] : vector<8x128xf32> to vector<8xf32>
    %20 = vector.shape_cast %19 : vector<8xf32> to vector<8x1xf32>
    %21 = arith.mulf %14, %17 : vector<8x1xf32>
    %cst_8 = arith.constant 1.000000e-16 : f32
    %22 = vector.broadcast %cst_8 : f32 to vector<8x1xf32>
    %23 = arith.maximumf %21, %22 : vector<8x1xf32>
    %24 = math.rsqrt %23 : vector<8x1xf32>
    %25 = arith.mulf %20, %24 : vector<8x1xf32>
    %26 = arith.subf %25, %3 : vector<8x1xf32>
    %27 = arith.mulf %26, %26 : vector<8x1xf32>
    %cst_9 = arith.constant 0.000000e+00 : f32
    %28 = vector.broadcast %cst_9 : f32 to vector<8x1xf32>
    %29 = arith.select %11, %27, %28 : vector<8x1xi1>, vector<8x1xf32>
    %30 = vector.shape_cast %29 : vector<8x1xf32> to vector<1x8x1xf32>
    %cst_10 = arith.constant dense<0.000000e+00> : vector<1xf32>
    %31 = vector.multi_reduction <add>, %30, %cst_10 [1, 2] : vector<1x8x1xf32> to vector<1xf32>
    %32 = vector.shape_cast %31 : vector<1xf32> to vector<1x1x1xf32>
    %33 = vector.extract %32[0, 0, 0] : f32 from vector<1x1x1xf32>
    %cst_11 = arith.constant 1.000000e-24 : f32
    %34 = vector.broadcast %cst_11 : f32 to vector<8x1xf32>
    %35 = arith.maximumf %14, %34 : vector<8x1xf32>
    %36 = math.rsqrt %35 : vector<8x1xf32>
    %37 = vector.broadcast %36 : vector<8x1xf32> to vector<8x128xf32>
    %38 = arith.mulf %0, %37 : vector<8x128xf32>
    %cst_12 = arith.constant 1.000000e-24 : f32
    %39 = vector.broadcast %cst_12 : f32 to vector<8x1xf32>
    %40 = arith.maximumf %17, %39 : vector<8x1xf32>
    %41 = math.rsqrt %40 : vector<8x1xf32>
    %42 = vector.broadcast %41 : vector<8x1xf32> to vector<8x128xf32>
    %43 = arith.mulf %1, %42 : vector<8x128xf32>
    %c0_13 = arith.constant 0 : index
    %c0_14 = arith.constant 0 : index
    %44 = vector.load %arg4[%c0_13, %c0_14] : memref<128x128xbf16, #tpu.memory_space<vmem>>, vector<128x128xbf16>
    %c0_15 = arith.constant 0 : index
    %c0_16 = arith.constant 0 : index
    %45 = vector.load %arg5[%c0_15, %c0_16] : memref<1x128xf32, #tpu.memory_space<vmem>>, vector<1x128xf32>
    %46 = tpu.iota {dimensions = array<i32: 1>} : vector<1x128xi32>
    %c4_i32 = arith.constant 4 : i32
    %47 = vector.broadcast %c4_i32 : i32 to vector<1x128xi32>
    %48 = arith.cmpi eq, %46, %47 : vector<1x128xi32>
    %49 = arith.truncf %38 : vector<8x128xf32> to vector<8x128xbf16>
    %cst_17 = arith.constant dense<0.000000e+00> : vector<8x128xf32>
    %50 = tpu.matmul %49, %44, %cst_17 {dimension_numbers = #tpu.dot_dimension_numbers<[1], [0], [0], [1], [0, 0, 1, 1], [], []>} : vector<8x128xbf16>, vector<128x128xbf16>, vector<8x128xf32> -> vector<8x128xf32>
    %51 = vector.broadcast %45 : vector<1x128xf32> to vector<8x128xf32>
    %52 = arith.addf %50, %51 : vector<8x128xf32>
    %53 = arith.fptosi %4 : vector<8x1xf32> to vector<8x1xi32>
    %cst_18 = arith.constant -1.000000e+30 : f32
    %54 = vector.shape_cast %48 : vector<1x128xi1> to vector<1x128xi1>
    %55 = vector.broadcast %54 : vector<1x128xi1> to vector<8x128xi1>
    %56 = vector.broadcast %cst_18 : f32 to vector<8x128xf32>
    %57 = arith.select %55, %56, %52 : vector<8x128xi1>, vector<8x128xf32>
    %cst_19 = arith.constant dense<0xFF800000> : vector<8xf32>
    %58 = vector.multi_reduction <maximumf>, %57, %cst_19 [1] : vector<8x128xf32> to vector<8xf32>
    %59 = vector.shape_cast %58 : vector<8xf32> to vector<8x1xf32>
    %60 = vector.broadcast %59 : vector<8x1xf32> to vector<8x128xf32>
    %61 = arith.subf %57, %60 : vector<8x128xf32>
    %62 = math.exp %61 : vector<8x128xf32>
    %cst_20 = arith.constant dense<0.000000e+00> : vector<8xf32>
    %63 = vector.multi_reduction <add>, %62, %cst_20 [1] : vector<8x128xf32> to vector<8xf32>
    %64 = vector.shape_cast %63 : vector<8xf32> to vector<8x1xf32>
    %65 = math.log %64 : vector<8x1xf32>
    %66 = arith.addf %59, %65 : vector<8x1xf32>
    %67 = vector.broadcast %46 : vector<1x128xi32> to vector<8x128xi32>
    %68 = vector.broadcast %53 : vector<8x1xi32> to vector<8x128xi32>
    %69 = arith.cmpi eq, %67, %68 : vector<8x128xi32>
    %cst_21 = arith.constant 0.000000e+00 : f32
    %70 = vector.broadcast %cst_21 : f32 to vector<8x128xf32>
    %71 = arith.select %69, %52, %70 : vector<8x128xi1>, vector<8x128xf32>
    %cst_22 = arith.constant dense<0.000000e+00> : vector<8xf32>
    %72 = vector.multi_reduction <add>, %71, %cst_22 [1] : vector<8x128xf32> to vector<8xf32>
    %73 = vector.shape_cast %72 : vector<8xf32> to vector<8x1xf32>
    %74 = arith.subf %66, %73 : vector<8x1xf32>
    %cst_23 = arith.constant 0.000000e+00 : f32
    %75 = vector.broadcast %cst_23 : f32 to vector<8x1xf32>
    %76 = arith.select %11, %74, %75 : vector<8x1xi1>, vector<8x1xf32>
    %77 = vector.shape_cast %76 : vector<8x1xf32> to vector<1x8x1xf32>
    %cst_24 = arith.constant dense<0.000000e+00> : vector<1xf32>
    %78 = vector.multi_reduction <add>, %77, %cst_24 [1, 2] : vector<1x8x1xf32> to vector<1xf32>
    %79 = vector.shape_cast %78 : vector<1xf32> to vector<1x1x1xf32>
    %80 = vector.extract %79[0, 0, 0] : f32 from vector<1x1x1xf32>
    %cst_25 = arith.constant 0.000000e+00 : f32
    %81 = vector.shape_cast %48 : vector<1x128xi1> to vector<1x128xi1>
    %82 = vector.broadcast %81 : vector<1x128xi1> to vector<8x128xi1>
    %83 = vector.broadcast %cst_25 : f32 to vector<8x128xf32>
    %84 = arith.select %82, %52, %83 : vector<8x128xi1>, vector<8x128xf32>
    %cst_26 = arith.constant dense<0.000000e+00> : vector<8xf32>
    %85 = vector.multi_reduction <add>, %84, %cst_26 [1] : vector<8x128xf32> to vector<8xf32>
    %86 = vector.shape_cast %85 : vector<8xf32> to vector<8x1xf32>
    %87 = arith.subf %86, %4 : vector<8x1xf32>
    %88 = arith.mulf %87, %87 : vector<8x1xf32>
    %cst_27 = arith.constant 0.000000e+00 : f32
    %89 = vector.broadcast %cst_27 : f32 to vector<8x1xf32>
    %90 = arith.select %11, %88, %89 : vector<8x1xi1>, vector<8x1xf32>
    %91 = vector.shape_cast %90 : vector<8x1xf32> to vector<1x8x1xf32>
    %cst_28 = arith.constant dense<0.000000e+00> : vector<1xf32>
    %92 = vector.multi_reduction <add>, %91, %cst_28 [1, 2] : vector<1x8x1xf32> to vector<1xf32>
    %93 = vector.shape_cast %92 : vector<1xf32> to vector<1x1x1xf32>
    %94 = vector.extract %93[0, 0, 0] : f32 from vector<1x1x1xf32>
    %95 = arith.truncf %43 : vector<8x128xf32> to vector<8x128xbf16>
    %cst_29 = arith.constant dense<0.000000e+00> : vector<8x128xf32>
    %96 = tpu.matmul %95, %44, %cst_29 {dimension_numbers = #tpu.dot_dimension_numbers<[1], [0], [0], [1], [0, 0, 1, 1], [], []>} : vector<8x128xbf16>, vector<128x128xbf16>, vector<8x128xf32> -> vector<8x128xf32>
    %97 = vector.broadcast %45 : vector<1x128xf32> to vector<8x128xf32>
    %98 = arith.addf %96, %97 : vector<8x128xf32>
    %99 = arith.fptosi %5 : vector<8x1xf32> to vector<8x1xi32>
    %cst_30 = arith.constant -1.000000e+30 : f32
    %100 = vector.shape_cast %48 : vector<1x128xi1> to vector<1x128xi1>
    %101 = vector.broadcast %100 : vector<1x128xi1> to vector<8x128xi1>
    %102 = vector.broadcast %cst_30 : f32 to vector<8x128xf32>
    %103 = arith.select %101, %102, %98 : vector<8x128xi1>, vector<8x128xf32>
    %cst_31 = arith.constant dense<0xFF800000> : vector<8xf32>
    %104 = vector.multi_reduction <maximumf>, %103, %cst_31 [1] : vector<8x128xf32> to vector<8xf32>
    %105 = vector.shape_cast %104 : vector<8xf32> to vector<8x1xf32>
    %106 = vector.broadcast %105 : vector<8x1xf32> to vector<8x128xf32>
    %107 = arith.subf %103, %106 : vector<8x128xf32>
    %108 = math.exp %107 : vector<8x128xf32>
    %cst_32 = arith.constant dense<0.000000e+00> : vector<8xf32>
    %109 = vector.multi_reduction <add>, %108, %cst_32 [1] : vector<8x128xf32> to vector<8xf32>
    %110 = vector.shape_cast %109 : vector<8xf32> to vector<8x1xf32>
    %111 = math.log %110 : vector<8x1xf32>
    %112 = arith.addf %105, %111 : vector<8x1xf32>
    %113 = vector.broadcast %46 : vector<1x128xi32> to vector<8x128xi32>
    %114 = vector.broadcast %99 : vector<8x1xi32> to vector<8x128xi32>
    %115 = arith.cmpi eq, %113, %114 : vector<8x128xi32>
    %cst_33 = arith.constant 0.000000e+00 : f32
    %116 = vector.broadcast %cst_33 : f32 to vector<8x128xf32>
    %117 = arith.select %115, %98, %116 : vector<8x128xi1>, vector<8x128xf32>
    %cst_34 = arith.constant dense<0.000000e+00> : vector<8xf32>
    %118 = vector.multi_reduction <add>, %117, %cst_34 [1] : vector<8x128xf32> to vector<8xf32>
    %119 = vector.shape_cast %118 : vector<8xf32> to vector<8x1xf32>
    %120 = arith.subf %112, %119 : vector<8x1xf32>
    %cst_35 = arith.constant 0.000000e+00 : f32
    %121 = vector.broadcast %cst_35 : f32 to vector<8x1xf32>
    %122 = arith.select %11, %120, %121 : vector<8x1xi1>, vector<8x1xf32>
    %123 = vector.shape_cast %122 : vector<8x1xf32> to vector<1x8x1xf32>
    %cst_36 = arith.constant dense<0.000000e+00> : vector<1xf32>
    %124 = vector.multi_reduction <add>, %123, %cst_36 [1, 2] : vector<1x8x1xf32> to vector<1xf32>
    %125 = vector.shape_cast %124 : vector<1xf32> to vector<1x1x1xf32>
    %126 = vector.extract %125[0, 0, 0] : f32 from vector<1x1x1xf32>
    %cst_37 = arith.constant 0.000000e+00 : f32
    %127 = vector.shape_cast %48 : vector<1x128xi1> to vector<1x128xi1>
    %128 = vector.broadcast %127 : vector<1x128xi1> to vector<8x128xi1>
    %129 = vector.broadcast %cst_37 : f32 to vector<8x128xf32>
    %130 = arith.select %128, %98, %129 : vector<8x128xi1>, vector<8x128xf32>
    %cst_38 = arith.constant dense<0.000000e+00> : vector<8xf32>
    %131 = vector.multi_reduction <add>, %130, %cst_38 [1] : vector<8x128xf32> to vector<8xf32>
    %132 = vector.shape_cast %131 : vector<8xf32> to vector<8x1xf32>
    %133 = arith.subf %132, %5 : vector<8x1xf32>
    %134 = arith.mulf %133, %133 : vector<8x1xf32>
    %cst_39 = arith.constant 0.000000e+00 : f32
    %135 = vector.broadcast %cst_39 : f32 to vector<8x1xf32>
    %136 = arith.select %11, %134, %135 : vector<8x1xi1>, vector<8x1xf32>
    %137 = vector.shape_cast %136 : vector<8x1xf32> to vector<1x8x1xf32>
    %cst_40 = arith.constant dense<0.000000e+00> : vector<1xf32>
    %138 = vector.multi_reduction <add>, %137, %cst_40 [1, 2] : vector<1x8x1xf32> to vector<1xf32>
    %139 = vector.shape_cast %138 : vector<1xf32> to vector<1x1x1xf32>
    %140 = vector.extract %139[0, 0, 0] : f32 from vector<1x1x1xf32>
    %141 = arith.addf %80, %126 : f32
    %142 = arith.addf %94, %140 : f32
    %143 = tpu.iota {dimensions = array<i32: 2>} : vector<1x8x128xi32>
    %144 = tpu.iota {dimensions = array<i32: 1>} : vector<1x8x128xi32>
    %c0_i32 = arith.constant 0 : i32
    %145 = vector.broadcast %c0_i32 : i32 to vector<1x8x128xi32>
    %146 = arith.cmpi eq, %144, %145 : vector<1x8x128xi32>
    %c0_i32_41 = arith.constant 0 : i32
    %147 = vector.broadcast %c0_i32_41 : i32 to vector<1x8x128xi32>
    %148 = arith.cmpi eq, %143, %147 : vector<1x8x128xi32>
    %149 = arith.andi %146, %148 : vector<1x8x128xi1>
    %c1_i32 = arith.constant 1 : i32
    %150 = vector.broadcast %c1_i32 : i32 to vector<1x8x128xi32>
    %151 = arith.cmpi eq, %143, %150 : vector<1x8x128xi32>
    %152 = arith.andi %146, %151 : vector<1x8x128xi1>
    %c2_i32 = arith.constant 2 : i32
    %153 = vector.broadcast %c2_i32 : i32 to vector<1x8x128xi32>
    %154 = arith.cmpi eq, %143, %153 : vector<1x8x128xi32>
    %155 = arith.andi %146, %154 : vector<1x8x128xi1>
    %cst_42 = arith.constant 0.000000e+00 : f32
    %156 = vector.broadcast %cst_42 : f32 to vector<1x8x128xf32>
    %157 = vector.broadcast %142 : f32 to vector<1x8x128xf32>
    %158 = arith.select %155, %157, %156 : vector<1x8x128xi1>, vector<1x8x128xf32>
    %159 = vector.broadcast %141 : f32 to vector<1x8x128xf32>
    %160 = arith.select %152, %159, %158 : vector<1x8x128xi1>, vector<1x8x128xf32>
    %161 = vector.broadcast %33 : f32 to vector<1x8x128xf32>
    %162 = arith.select %149, %161, %160 : vector<1x8x128xi1>, vector<1x8x128xf32>
    %c0_43 = arith.constant 0 : index
    %c0_44 = arith.constant 0 : index
    %c0_45 = arith.constant 0 : index
    %163 = vector.load %arg6[%c0_43, %c0_44, %c0_45] : memref<1x8x128xf32, #tpu.memory_space<vmem>>, vector<1x8x128xf32>
    tpu.vector_store %arg6[%c0_43, %c0_44, %c0_45], %162 {strides = array<i32>} : memref<1x8x128xf32, #tpu.memory_space<vmem>>, vector<1x8x128xf32>,
    return
  }
  func.func @transform_0(%arg0: i32) -> (i32, i32) {
    %c0_i32 = arith.constant 0 : i32
    %c0_i32_0 = arith.constant 0 : i32
    return %arg0, %c0_i32 : i32, i32
  }
  func.func @transform_1(%arg0: i32) -> (i32, i32) {
    %c0_i32 = arith.constant 0 : i32
    %c0_i32_0 = arith.constant 0 : i32
    return %arg0, %c0_i32 : i32, i32
  }
  func.func @transform_2(%arg0: i32) -> (i32, i32) {
    %c0_i32 = arith.constant 0 : i32
    %c0_i32_0 = arith.constant 0 : i32
    return %arg0, %c0_i32 : i32, i32
  }
  func.func @transform_3(%arg0: i32) -> (i32, i32) {
    %c0_i32 = arith.constant 0 : i32
    %c0_i32_0 = arith.constant 0 : i32
    %c0_i32_1 = arith.constant 0 : i32
    return %c0_i32, %c0_i32_0 : i32, i32
  }
  func.func @transform_4(%arg0: i32) -> (i32, i32) {
    %c0_i32 = arith.constant 0 : i32
    %c0_i32_0 = arith.constant 0 : i32
    %c0_i32_1 = arith.constant 0 : i32
    return %c0_i32, %c0_i32_0 : i32, i32
  }
  func.func @transform_5(%arg0: i32) -> (i32, i32, i32) {
    %c0_i32 = arith.constant 0 : i32
    %c0_i32_0 = arith.constant 0 : i32
    %c0_i32_1 = arith.constant 0 : i32
    return %arg0, %c0_i32, %c0_i32_0 : i32, i32, i32
  }
}

</mosaic_0001>

<bundles_post_ra>
// kernel: tpu_custom_call.1
= control target key start
LH: loop header
LB: loop body
LE: loop exit
PB: predicated region body
PF: predicated region fallthrough
CT: control target
= control target key end

     0   :  { %10 = vsyncpa [#allocation3], 0  ;;  %s619_s0 = inlined_call_operand.vmem [shape: f32[8,128], index: 0, kind: input, shape index: {}]   ;;  %s620_s1 = inlined_call_operand.hbm [shape: f32[8,128], index: 1, kind: input, shape index: {}]   ;;  %s621_s2 = inlined_call_operand.vmem [shape: f32[8,3], index: 2, kind: input, shape index: {}]   ;;  %s622_s3 = inlined_call_operand.hbm [shape: bf16[128,128], index: 3, kind: input, shape index: {}]   ;;  %s623_s4 = inlined_call_operand.vmem [shape: f32[1,128], index: 4, kind: input, shape index: {}]   ;;  %s624_s5 = inlined_call_operand.hbm [shape: f32[1,8,128], index: 5, kind: output, shape index: {}]  }
   0x1   :  { %11 = vsyncpa [#allocation6], 0 }
   0x2   :  { %12 = vsyncpa [#allocation4], 0  ;;  %s20_s20 = sshll.u32 %s620_s1, 4  ;;  %s515_s21 = smov [#allocation2]   ;;  %s21_s20 = int_to_ptr.hbm [resolvable:$true] %s20_s20 }
   0x3   :  { %s22_s22 = sshll.u32 %s515_s21, 4  ;;  %s32_s25 = sshll.u32 %s622_s3, 4  ;;  %s23_s22 = int_to_ptr.vmem [resolvable:$true] %s22_s22  ;;  %s33_s25 = int_to_ptr.hbm [resolvable:$true] %s32_s25 }
   0x4   :  { %25 = dma.hbm_to_vmem [thread:$0]  %s21_s20, 128, %s23_s22, [#allocation3]  }
   0x5   :  { %s516_s26 = smov [#allocation5]   ;;  %s517_s28 = smov 64  }
   0x6   :  { %s34_s27 = sshll.u32 %s516_s26, 4  ;;  %s518_s29 = smov 4   ;;  %s35_s27 = int_to_ptr.vmem [resolvable:$true] %s34_s27 }
   0x7   :  { %40 = dma.hbm_to_vmem [thread:$0]  %s33_s25, 1024, %s35_s27, [#allocation6], %s517_s28, %s517_s28, %s518_s29  }
   0x8   :  { %509 = dma.done.wait [#allocation3], 128  }
   0x9   :  { %510 = vsyncadd [#allocation3], 4294967168 }
   0xa   :  { %511 = dma.done.wait [#allocation6], 1024  }
   0xb   :  { %512 = vsyncadd [#allocation6], 4294966272  ;;  %v563_v0 = vld [vmem:[%s619_s0] sm:$0xff]  ;;  %v394_v3 = vld [vmem:[#allocation5 + $0x30] sm:$0xff]  ;;  %v519_v15 = vmov 2   ;;  %v520_v18 = vmov 1   ;;  %v55_v41 = vlaneseq }
   0xc   :  { %v395_v1 = vld [vmem:[#allocation5 + $0x38] sm:$0xff]  ;;  %v60_v2 = vmul.f32 %v563_v0, %v563_v0  ;;  %v393_v6 = vld [vmem:[#allocation5 + $0x28] sm:$0xff]  ;;  %v392_v7 = vld [vmem:[#allocation5 + $0x20] sm:$0xff]  ;;  %421 = vset.pattern.permute.xlu0 %v519_v15  ;;  %420 = vset.pattern.permute.xlu2 %v520_v18  ;;  %vm85_vm13 = vcmask 7168   ;;  %s522_s7 = smov 126   ;;  %s523_s15 = smov [#allocation7]  }
   0xd   :  { %192 = vmatpush.bf16.msra.mxu0 %v395_v1  ;;  %259 = vmatpush.bf16.msra.mxu1 %v395_v1  ;;  %v567_v4 = vld [vmem:[#allocation2] sm:$0xff]  ;;  %v390_v9 = vld [vmem:[#allocation5 + $0x10] sm:$0xff]  ;;  %v389_v10 = vld [vmem:[#allocation5 + $0x8] sm:$0xff]  ;;  %v585_v42 = vand.u32 127, %v55_v41  ;;  %s343_s16 = sshll.u32 %s523_s15, 4  ;;  %s345_s19 = sshll.u32 %s624_s5, 4  ;;  %s344_s16 = int_to_ptr.vmem [resolvable:$true] %s343_s16  ;;  %s346_s19 = int_to_ptr.hbm [resolvable:$true] %s345_s19 }
   0xe   :  { %61 = vadd.xlane.f32.xlu0 %v60_v2  ;;  %v63_v5 = vmul.f32 %v567_v4, %v567_v4  ;;  %v391_v8 = vld [vmem:[#allocation5 + $0x18] sm:$0xff]  ;;  %v388_v11 = vld [vmem:[#allocation5] sm:$0xff]  ;;  %v66_v55 = vmul.f32 %v567_v4, %v563_v0 }
   0xf   :  { %v577_v14 = vld [vmem:[%s621_s2] sm:$0xff]  ;;  %vm139_vm7 = vcmp.eq.s32.totalorder %v585_v42, 4  ;;  %vm329_vm15 = vcmp.eq.s32.totalorder %v585_v42, 2 }
  0x10   :  { %vm398_vm0 = vcmp.lt.s32.totalorder %v577_v14, 0  ;;  %v399_v16 = vceil.f32 %v577_v14  ;;  %v400_v17 = vfloor.f32 %v577_v14  ;;  %v422_v43 = vld [vmem:[%s623_s4] ss:$0 sm:$0xff]  ;;  %s521_s4 = smov 127  }
  0x11   :  { %193 = vmatpush.bf16.msra.mxu0 %v394_v3  ;;  %260 = vmatpush.bf16.msra.mxu1 %v394_v3 }
  0x12   :  { %v401_v19 = vsel %vm398_vm0, %v399_v16, %v400_v17  ;;  %vm327_vm0 = vcmp.eq.s32.totalorder %v585_v42, 1 }
  0x13   :  { %v402_v20 = vcvt.f32.s32 %v401_v19 }
  0x15   :  { %194 = vmatpush.bf16.msra.mxu0 %v393_v6  ;;  %261 = vmatpush.bf16.msra.mxu1 %v393_v6 }
  0x16   :  { %64 = vadd.xlane.f32.xlu0 %v63_v5  ;;  %220 = vperm.xlu2 %420, %v402_v20  }
  0x19   :  { %195 = vmatpush.bf16.msra.mxu0 %v392_v7  ;;  %262 = vmatpush.bf16.msra.mxu1 %v392_v7 }
  0x1d   :  { %196 = vmatpush.bf16.msra.mxu0 %v391_v8  ;;  %263 = vmatpush.bf16.msra.mxu1 %v391_v8 }
  0x21   :  { %197 = vmatpush.bf16.msra.mxu0 %v390_v9  ;;  %264 = vmatpush.bf16.msra.mxu1 %v390_v9 }
  0x25   :  { %198 = vmatpush.bf16.msra.mxu0 %v389_v10  ;;  %265 = vmatpush.bf16.msra.mxu1 %v389_v10 }
  0x29   :  { %199 = vmatpush.bf16.msra.mxu0 %v388_v11  ;;  %266 = vmatpush.bf16.msra.mxu1 %v388_v11 }
  0x2a   :  { %284 = vperm.xlu0 %421, %v402_v20  }
  0x70   :  { %v221_v57 = vpop.permute.xlu2 %220 }
  0x71   :  { %vm222_vm9 = vcmp.eq.s32.totalorder %v585_v42, %v221_v57 }
  0x81   :  { %v571_v12 = vpop.xlane.xlu0 %61 }
  0x82   :  { %v96_v13 = vmax.f32 %v571_v12, 1e-24 }
  0x84   :  { %423 = vrsqrt.f32 %v96_v13  ;;  %vm103_vm2 = vweird.f32 %v96_v13 }
  0x89   :  { %v65_v21 = vpop.xlane.xlu0 %64 }
  0x8a   :  { %v424_v22 = vpop.eup %423  ;;  %v108_v23 = vmax.f32 %v65_v21, 1e-24  ;;  %v69_v59 = vmul.f32 %v65_v21, %v571_v12 }
  0x8b   :  { %v98_v24 = vmul.f32 %v424_v22, %v96_v13  ;;  %vm104_vm1 = vweird.f32 %v424_v22 }
  0x8c   :  { %425 = vrsqrt.f32 %v108_v23  ;;  %vm105_vm3 = vmor %vm103_vm2, %vm104_vm1  ;;  %vm115_vm5 = vweird.f32 %v108_v23  ;;  %v70_v60 = vmax.f32 %v69_v59, 1e-16  ;;  %vm325_vm1 = vcmp.eq.s32.totalorder %v585_v42, 0 }
  0x8d   :  { %v99_v25 = vmul.f32 %v424_v22, %v98_v24 }
  0x8e   :  { %427 = vrsqrt.f32 %v70_v60  ;;  %vm77_vm11 = vweird.f32 %v70_v60 }
  0x8f   :  { %v100_v26 = vmul.f32 0.5, %v99_v25 }
  0x91   :  { %v101_v27 = vsub.f32 1.5, %v100_v26 }
  0x92   :  { %v426_v28 = vpop.eup %425 }
  0x93   :  { %v110_v29 = vmul.f32 %v426_v28, %v108_v23  ;;  %v102_v30 = vmul.f32 %v424_v22, %v101_v27  ;;  %vm116_vm4 = vweird.f32 %v426_v28 }
  0x94   :  { %vm117_vm6 = vmor %vm115_vm5, %vm116_vm4  ;;  %v428_v61 = vpop.eup %427 }
  0x95   :  { %v111_v31 = vmul.f32 %v426_v28, %v110_v29  ;;  %v106_v32 = vsel %vm105_vm3, %v424_v22, %v102_v30  ;;  %v72_v62 = vmul.f32 %v428_v61, %v70_v60  ;;  %vm78_vm10 = vweird.f32 %v428_v61 }
  0x96   :  { %v107_v33 = vmul.f32 %v106_v32, %v563_v0  ;;  %vm79_vm12 = vmor %vm77_vm11, %vm78_vm10 }
  0x97   :  { %v112_v34 = vmul.f32 0.5, %v111_v31  ;;  %v73_v63 = vmul.f32 %v428_v61, %v72_v62 }
  0x98   :  { %v140_v35 = vpack.c.bf16 %v107_v33, %v107_v33 }
  0x99   :  { %v113_v36 = vsub.f32 1.5, %v112_v34  ;;  %v74_v6 = vmul.f32 0.5, %v73_v63 }
  0x9a   :  { %200 = vmatmul.bf16.vlgmr.msra.gmra.mxu0 %v140_v35 }
  0x9b   :  { %v114_v37 = vmul.f32 %v426_v28, %v113_v36  ;;  %v75_v8 = vsub.f32 1.5, %v74_v6 }
  0x9c   :  { %v285_v48 = vpop.permute.xlu0 %284 }
  0x9d   :  { %v118_v38 = vsel %vm117_vm6, %v426_v28, %v114_v37  ;;  %vm286_vm8 = vcmp.eq.s32.totalorder %v585_v42, %v285_v48  ;;  %v76_v12 = vmul.f32 %v428_v61, %v75_v8 }
  0x9e   :  { %v119_v39 = vmul.f32 %v118_v38, %v567_v4 }
  0x9f   :  { %v80_v13 = vsel %vm79_vm12, %v428_v61, %v76_v12 }
  0xa0   :  { %v258_v40 = vpack.c.bf16 %v119_v39, %v119_v39 }
  0xa2   :  { %267 = vmatmul.bf16.vlgmr.msra.gmra.mxu1 %v258_v40 }
 0x117   :  { %v201_v44 = vpop.f32.mrf.mxu0 }
 0x118   :  { %v202_v45 = vadd.f32 %v422_v43, %v201_v44 }
 0x11a   :  { %v238_v46 = vsel %vm139_vm7, %v202_v45, 0.0  ;;  %v208_v47 = vsel %vm139_vm7, -1e+30, %v202_v45  ;;  %v223_v58 = vsel %vm222_vm9, %v202_v45, 0.0 }
 0x11b   :  { %239 = vadd.xlane.f32.xlu2 %v238_v46  ;;  %209 = vmax.xlane.f32.xlu1 %v208_v47 }
 0x11f   :  { %v203_v49 = vpop.f32.mrf.mxu0  ;;  %v268_v50 = vpop.f32.mrf.mxu1 }
 0x120   :  { %v269_v51 = vadd.f32 %v422_v43, %v268_v50 }
 0x122   :  { %v272_v52 = vsel %vm139_vm7, -1e+30, %v269_v51  ;;  %v287_v53 = vsel %vm286_vm8, %v269_v51, 0.0  ;;  %v302_v56 = vsel %vm139_vm7, %v269_v51, 0.0 }
 0x123   :  { %273 = vmax.xlane.f32.xlu1 %v272_v52  ;;  %288 = vadd.xlane.f32.xlu2 %v287_v53 }
 0x127   :  { %v270_v54 = vpop.f32.mrf.mxu1 }
 0x12b   :  { %67 = vadd.xlane.f32.xlu1 %v66_v55 }
 0x133   :  { %303 = vadd.xlane.f32.xlu1 %v302_v56 }
 0x13b   :  { %224 = vadd.xlane.f32.xlu1 %v223_v58 }
 0x18e   :  { %v240_v1 = vpop.xlane.xlu2 %239  ;;  %v210_v2 = vpop.xlane.xlu1 %209 }
 0x18f   :  { %v241_v0 = vsub.f32 %v240_v1, %v577_v14  ;;  %v211_v3 = vsub.f32 %v208_v47, %v210_v2 }
 0x191   :  { %v242_v4 = vmul.f32 %v241_v0, %v241_v0  ;;  %v212_v5 = vmul.f32 1.442695, %v211_v3 }
 0x193   :  { %429 = vpow2.f32 %v212_v5  ;;  %245 = vrot.lane.b32.xlu0 %v242_v4, %s521_s4 }
 0x196   :  { %v274_v7 = vpop.xlane.xlu1 %273  ;;  %v289_v28 = vpop.xlane.xlu2 %288 }
 0x197   :  { %v275_v9 = vsub.f32 %v272_v52, %v274_v7 }
 0x199   :  { %v430_v10 = vpop.eup %429  ;;  %v276_v11 = vmul.f32 1.442695, %v275_v9 }
 0x19a   :  { %214 = vadd.xlane.f32.xlu1 %v430_v10 }
 0x19b   :  { %431 = vpow2.f32 %v276_v11 }
 0x19e   :  { %v68_v15 = vpop.xlane.xlu1 %67 }
 0x19f   :  { %v81_v16 = vmul.f32 %v80_v13, %v68_v15  ;;  %v56_v15 = vshrl.u32 %v55_v41, 7 }
 0x1a1   :  { %v432_v17 = vpop.eup %431  ;;  %v82_v18 = vsub.f32 %v81_v16, %v577_v14  ;;  %vm324_vm14 = vcmp.eq.s32.totalorder %v56_v15, 0 }
 0x1a2   :  { %278 = vadd.xlane.f32.xlu1 %v432_v17  ;;  %vm330_vm2 = vmand %vm324_vm14, %vm329_vm15 }
 0x1a3   :  { %v83_v19 = vmul.f32 %v82_v18, %v82_v18  ;;  %vm328_vm3 = vmand %vm324_vm14, %vm327_vm0 }
 0x1a4   :  { %vm326_vm4 = vmand %vm324_vm14, %vm325_vm1 }
 0x1a5   :  { %v86_v20 = vsel %vm85_vm13, %v83_v19, 0.0 }
 0x1a6   :  { %87 = vadd.xlane.f32.xlu2 %v86_v20  ;;  %v304_v21 = vpop.xlane.xlu1 %303 }
 0x1a7   :  { %v305_v22 = vsub.f32 %v304_v21, %v577_v14 }
 0x1a9   :  { %v306_v23 = vmul.f32 %v305_v22, %v305_v22 }
 0x1ae   :  { %v225_v24 = vpop.xlane.xlu1 %224 }
 0x1bb   :  { %309 = vrot.lane.b32.xlu1 %v306_v23, %s522_s7 }
 0x205   :  { %v246_v25 = vpop.permute.xlu0 %245 }
 0x206   :  { %v248_v26 = vsel %vm85_vm13, %v246_v25, 0.0 }
 0x207   :  { %249 = vadd.xlane.f32.xlu2 %v248_v26 }
 0x20d   :  { %v215_v27 = vpop.xlane.xlu1 %214 }
 0x20e   :  { %433 = vlog2.f32 %v215_v27 }
 0x214   :  { %v434_v29 = vpop.eup %433 }
 0x215   :  { %v217_v30 = vmul.f32 0.6931472, %v434_v29  ;;  %v279_v31 = vpop.xlane.xlu1 %278 }
 0x216   :  { %435 = vlog2.f32 %v279_v31 }
 0x217   :  { %v218_v32 = vadd.f32 %v217_v30, %v210_v2 }
 0x219   :  { %v88_v33 = vpop.xlane.xlu2 %87  ;;  %v226_v34 = vsub.f32 %v218_v32, %v225_v24 }
 0x21a   :  { %v89_v35 = vrot.slane %v88_v33, 4 }
 0x21b   :  { %v228_v14 = vsel %vm85_vm13, %v226_v34, 0.0 }
 0x21c   :  { %v436_v36 = vpop.eup %435  ;;  %v90_v37 = vadd.f32 %v89_v35, %v88_v33  ;;  %229 = vadd.xlane.f32.xlu0 %v228_v14 }
 0x21d   :  { %v281_v38 = vmul.f32 0.6931472, %v436_v36 }
 0x21e   :  { %v91_v39 = vrot.slane %v90_v37, 2 }
 0x21f   :  { %v282_v40 = vadd.f32 %v281_v38, %v274_v7 }
 0x220   :  { %v92_v43 = vadd.f32 %v91_v39, %v90_v37 }
 0x221   :  { %v290_v44 = vsub.f32 %v282_v40, %v289_v28 }
 0x222   :  { %v93_v45 = vrot.slane %v92_v43, 1 }
 0x223   :  { %v292_v46 = vsel %vm85_vm13, %v290_v44, 0.0 }
 0x224   :  { %293 = vadd.xlane.f32.xlu2 %v292_v46  ;;  %v94_v47 = vadd.f32 %v93_v45, %v92_v43 }
 0x226   :  { %396 = vpush %v94_v47 }
 0x22d   :  { %v310_v48 = vpop.permute.xlu1 %309 }
 0x22e   :  { %v312_v49 = vsel %vm85_vm13, %v310_v48, 0.0 }
 0x22f   :  { %313 = vadd.xlane.f32.xlu1 %v312_v49 }
 0x257   :  { %s397_s8 = spop %396 }
 0x258   :  { %v335_v18 = vstv %s397_s8 }
 0x27a   :  { %v250_v50 = vpop.xlane.xlu2 %249 }
 0x27b   :  { %v251_v51 = vrot.slane %v250_v50, 4 }
 0x27d   :  { %v252_v52 = vadd.f32 %v251_v51, %v250_v50 }
 0x27f   :  { %v253_v53 = vrot.slane %v252_v52, 2 }
 0x281   :  { %v254_v57 = vadd.f32 %v253_v53, %v252_v52 }
 0x283   :  { %v255_v61 = vrot.slane %v254_v57, 1 }
 0x285   :  { %v256_v0 = vadd.f32 %v255_v61, %v254_v57 }
 0x28f   :  { %v230_v54 = vpop.xlane.xlu0 %229 }
 0x290   :  { %v231_v55 = vrot.slane %v230_v54, 4 }
 0x292   :  { %v232_v56 = vadd.f32 %v231_v55, %v230_v54 }
 0x294   :  { %v233_v58 = vrot.slane %v232_v56, 2 }
 0x296   :  { %v234_v59 = vadd.f32 %v233_v58, %v232_v56 }
 0x297   :  { %v294_v60 = vpop.xlane.xlu2 %293 }
 0x298   :  { %v295_v62 = vrot.slane %v294_v60, 4  ;;  %v235_v63 = vrot.slane %v234_v59, 1 }
 0x29a   :  { %v296_v1 = vadd.f32 %v295_v62, %v294_v60  ;;  %v236_v2 = vadd.f32 %v235_v63, %v234_v59 }
 0x29c   :  { %v297_v3 = vrot.slane %v296_v1, 2  ;;  %403 = vpush %v236_v2 }
 0x29d   :  { %405 = vpush %v256_v0 }
 0x29e   :  { %v298_v4 = vadd.f32 %v297_v3, %v296_v1 }
 0x2a0   :  { %v299_v5 = vrot.slane %v298_v4, 1 }
 0x2a2   :  { %v314_v6 = vpop.xlane.xlu1 %313  ;;  %v300_v7 = vadd.f32 %v299_v5, %v298_v4 }
 0x2a3   :  { %v315_v8 = vrot.slane %v314_v6, 4 }
 0x2a4   :  { %407 = vpush %v300_v7 }
 0x2a5   :  { %v316_v9 = vadd.f32 %v315_v8, %v314_v6 }
 0x2a7   :  { %v317_v10 = vrot.slane %v316_v9, 2 }
 0x2a9   :  { %v318_v11 = vadd.f32 %v317_v10, %v316_v9 }
 0x2ab   :  { %v319_v12 = vrot.slane %v318_v11, 1 }
 0x2ad   :  { %v320_v13 = vadd.f32 %v319_v12, %v318_v11 }
 0x2af   :  { %409 = vpush %v320_v13 }
 0x2cd   :  { %s404_s9 = spop %403 }
 0x2ce   :  { %s406_s10 = spop %405 }
 0x2d5   :  { %s408_s11 = spop %407 }
 0x2d6   :  { %s322_s12 = sadd.f32 %s408_s11, %s404_s9 }
 0x2d8   :  { %v333_v16 = vstv %s322_s12 }
 0x2e0   :  { %s410_s13 = spop %409 }
 0x2e1   :  { %s323_s14 = sadd.f32 %s410_s13, %s406_s10 }
 0x2e3   :  { %v331_v41 = vstv %s323_s14 }
 0x2e4   :  { %v332_v17 = vsel %vm330_vm2, %v331_v41, 0.0 }
 0x2e5   :  { %v334_v19 = vsel %vm328_vm3, %v333_v16, %v332_v17 }
 0x2e6   :  { %v336_v20 = vsel %vm326_vm4, %v335_v18, %v334_v19 }
 0x2e7   :  { %337 = vst [vmem:[#allocation7] sm:$0xff] %v336_v20 }
 0x2e8   :  { %348 = dma.vmem_to_hbm [thread:$0]  %s344_s16, 128, %s346_s19, [#allocation4]  }
 0x2e9   :  { %513 = dma.done.wait [#allocation4], 128  }
 0x2ea   :  { %514 = vsyncadd [#allocation4], 4294967168 }
 0x2eb   :  { %353 = vsyncpa [#allocation3], 1 }
 0x2ec   :  { %354 = vsyncpa [#allocation6], 1 }
 0x2ed   :  { %355 = vsyncpa [#allocation4], 1 }

</bundles_post_ra>
